<compile_context>
chip_gen: v7x
topology: tpu7x:2x2x1
jax: 0.10.0
libtpu: 0.0.40
codegen_flags: <defaults>
</compile_context>

<pallas_src>
import jax
import jax.numpy as jnp
from jax.experimental import pallas as pl
from jax.experimental.pallas import tpu as pltpu

D_IN = 3        # logical input features
HID = 20        # logical hidden width
N_CLS = 3       # logical number of classes

LANES = 128     # padded lane width for every feature axis
SUBLANE = 8     # f32 sublane granularity
MAX_TILE_B = 512


# ---------------------------------------------------------------------------
# Pallas kernel: fused 3-layer MLP on one batch tile.
#   x_ref   : [TILE_B, 3]      (compact; lane-padded here in VMEM scratch)
#   w*_ref  : [128, 128]       (zero-padded, VMEM-resident across the grid)
#   b*_ref  : [1, 128]
#   o_ref   : [TILE_B, 128]    (lane-dense output; sliced to [:, :3] outside)
#   xpad_ref: [TILE_B, 128]    VMEM scratch used to lane-pad x
# ---------------------------------------------------------------------------
def _mlp_kernel(x_ref, w1_ref, b1_ref, w2_ref, b2_ref, w3_ref, b3_ref,
                o_ref, xpad_ref):
    # Lane-pad the compact input tile to 128 lanes (zero lanes 3..127).
    # Unconditional re-zero each step keeps it correct under megacore
    # sharding (a core whose first step is not program_id 0 still zeroes).
    xpad_ref[...] = jnp.zeros_like(xpad_ref)
    xpad_ref[:, 0:D_IN] = x_ref[...]
    x = xpad_ref[...]

    h1 = jnp.dot(x, w1_ref[...], preferred_element_type=jnp.float32) + b1_ref[...]
    h1 = jnp.maximum(h1, 0.0)                      # ReLU (VPU)

    h2 = jnp.dot(h1, w2_ref[...], preferred_element_type=jnp.float32) + b2_ref[...]
    h2 = jnp.maximum(h2, 0.0)                      # ReLU

    out = jnp.dot(h2, w3_ref[...], preferred_element_type=jnp.float32) + b3_ref[...]
    o_ref[...] = out.astype(o_ref.dtype)


def _round_up(n, m):
    return ((n + m - 1) // m) * m


# ---------------------------------------------------------------------------
# One-time parameter padding (done OUTSIDE the per-call hot path).
# Weights are stored as [in_features, out_features] so that x @ W + b matches
# PyTorch's x @ W.T + b with W of shape [out, in].
# ---------------------------------------------------------------------------
def prepare_params(params):
    w1, b1, w2, b2, w3, b3 = params

    def pad2(a, rows, cols):
        r, c = a.shape
        return jnp.pad(a.astype(jnp.float32), ((0, rows - r), (0, cols - c)))

    return (
        pad2(w1, LANES, LANES),
        pad2(b1.reshape(1, -1), 1, LANES),
        pad2(w2, LANES, LANES),
        pad2(b2.reshape(1, -1), 1, LANES),
        pad2(w3, LANES, LANES),
        pad2(b3.reshape(1, -1), 1, LANES),
    )


@jax.jit
def iris_forward(x, padded_params):
    """x: [B, 3] float32 -> logits: [B, 3] float32."""
    w1p, b1p, w2p, b2p, w3p, b3p = padded_params
    B = x.shape[0]

    Bp = _round_up(B, SUBLANE)
    tile_b = min(MAX_TILE_B, Bp)
    Bg = _round_up(Bp, tile_b)          # total padded batch (multiple of tile_b)
    grid = (Bg // tile_b,)

    # Only the batch axis of x is padded; features stay compact (3 lanes).
    xp = jnp.pad(x.astype(jnp.float32), ((0, Bg - B), (0, 0)))

    flops = int(2 * Bg * LANES * LANES * 3)
    bytes_accessed = int(
        Bg * D_IN * 4                   # compact x read
        + 3 * LANES * LANES * 4         # resident weights
        + 3 * LANES * 4                 # resident biases
        + Bg * LANES * 4                # output write
    )

    out_p = pl.pallas_call(
        _mlp_kernel,
        out_shape=jax.ShapeDtypeStruct((Bg, LANES), jnp.float32),
        grid=grid,
        in_specs=[
            pl.BlockSpec((tile_b, D_IN), lambda i: (i, 0)),    # x: batch-tiled
            pl.BlockSpec((LANES, LANES), lambda i: (0, 0)),    # w1 (resident)
            pl.BlockSpec((1, LANES), lambda i: (0, 0)),        # b1
            pl.BlockSpec((LANES, LANES), lambda i: (0, 0)),    # w2
            pl.BlockSpec((1, LANES), lambda i: (0, 0)),        # b2
            pl.BlockSpec((LANES, LANES), lambda i: (0, 0)),    # w3
            pl.BlockSpec((1, LANES), lambda i: (0, 0)),        # b3
        ],
        out_specs=pl.BlockSpec((tile_b, LANES), lambda i: (i, 0)),
        scratch_shapes=[pltpu.VMEM((tile_b, LANES), jnp.float32)],
        compiler_params=pltpu.CompilerParams(
            dimension_semantics=("parallel",)),
        cost_estimate=pl.CostEstimate(
            flops=flops, transcendentals=0, bytes_accessed=bytes_accessed),
    )(xp, w1p, b1p, w2p, b2p, w3p, b3p)

    return out_p[:B, :N_CLS]


# ---------------------------------------------------------------------------
# Deterministic parameter init (matches PyTorch nn.Linear default: U(-k, k),
# k = 1/sqrt(fan_in), for both weight and bias). Weights stored as [in, out].
# ---------------------------------------------------------------------------
def init_params(key):
    def linear(key, fan_in, fan_out):
        kw, kb = jax.random.split(key)
        bound = 1.0 / jnp.sqrt(fan_in)
        w = jax.random.uniform(kw, (fan_in, fan_out), jnp.float32, -bound, bound)
        b = jax.random.uniform(kb, (fan_out,), jnp.float32, -bound, bound)
        return w, b

    k1, k2, k3 = jax.random.split(key, 3)
    w1, b1 = linear(k1, D_IN, HID)
    w2, b2 = linear(k2, HID, HID)
    w3, b3 = linear(k3, HID, N_CLS)
    return (w1, b1, w2, b2, w3, b3)


def reference_forward(x, params):
    w1, b1, w2, b2, w3, b3 = params
    h1 = jnp.maximum(x @ w1 + b1, 0.0)
    h2 = jnp.maximum(h1 @ w2 + b2, 0.0)
    return h2 @ w3 + b3


if __name__ == "__main__":
    key = jax.random.PRNGKey(0)
    k_params, k_x = jax.random.split(key)

    params = init_params(k_params)
    padded_params = prepare_params(params)      # pad ONCE, outside the hot path
    x = jax.random.normal(k_x, (8, 3), dtype=jnp.float32)  # batch=8, 3 features

    out = jax.block_until_ready(iris_forward(x, padded_params))

    # Sanity check against pure-JAX reference.
    ref = reference_forward(x, params)
    assert out.shape == (8, N_CLS)
    assert jnp.allclose(out, ref, atol=1e-5, rtol=1e-5), "mismatch vs reference"

    print("KERNEL_OK")
</pallas_src>

<mosaic_0001>
module attributes {stable_mosaic.version = 11 : i64} {
  func.func @_mlp_kernel(%arg0: i32, %arg1: memref<8x3xf32, #tpu.memory_space<vmem>>, %arg2: memref<128x128xf32, #tpu.memory_space<vmem>>, %arg3: memref<1x128xf32, #tpu.memory_space<vmem>>, %arg4: memref<128x128xf32, #tpu.memory_space<vmem>>, %arg5: memref<1x128xf32, #tpu.memory_space<vmem>>, %arg6: memref<128x128xf32, #tpu.memory_space<vmem>>, %arg7: memref<1x128xf32, #tpu.memory_space<vmem>>, %arg8: memref<8x128xf32, #tpu.memory_space<vmem>>, %arg9: memref<8x128xf32, #tpu.memory_space<vmem>>) attributes {dimension_semantics = [#tpu.dimension_semantics<parallel>], iteration_bounds = array<i64: 1>, scalar_prefetch = 0 : i64, scratch_operands = 1 : i64, tpu.core_type = #tpu.core_type<tc>, window_params = [{transform_indices = @transform_0, window_bounds = array<i64: 8, 3>}, {pipeline_mode = #tpu.pipeline_mode<synchronous>, transform_indices = @transform_1, window_bounds = array<i64: 128, 128>}, {pipeline_mode = #tpu.pipeline_mode<synchronous>, transform_indices = @transform_2, window_bounds = array<i64: 1, 128>}, {pipeline_mode = #tpu.pipeline_mode<synchronous>, transform_indices = @transform_3, window_bounds = array<i64: 128, 128>}, {pipeline_mode = #tpu.pipeline_mode<synchronous>, transform_indices = @transform_4, window_bounds = array<i64: 1, 128>}, {pipeline_mode = #tpu.pipeline_mode<synchronous>, transform_indices = @transform_5, window_bounds = array<i64: 128, 128>}, {pipeline_mode = #tpu.pipeline_mode<synchronous>, transform_indices = @transform_6, window_bounds = array<i64: 1, 128>}, {transform_indices = @transform_7, window_bounds = array<i64: 8, 128>}]} {
    %cst = arith.constant 0.000000e+00 : f32
    %0 = vector.broadcast %cst : f32 to vector<8x128xf32>
    %c0 = arith.constant 0 : index
    %c0_0 = arith.constant 0 : index
    %1 = vector.load %arg9[%c0, %c0_0] : memref<8x128xf32, #tpu.memory_space<vmem>>, vector<8x128xf32>
    tpu.vector_store %arg9[%c0, %c0_0], %0 {strides = array<i32>} : memref<8x128xf32, #tpu.memory_space<vmem>>, vector<8x128xf32>,
    %c0_1 = arith.constant 0 : index
    %c0_2 = arith.constant 0 : index
    %2 = vector.load %arg1[%c0_1, %c0_2] : memref<8x3xf32, #tpu.memory_space<vmem>>, vector<8x3xf32>
    %c0_3 = arith.constant 0 : index
    %c0_4 = arith.constant 0 : index
    %3 = vector.load %arg9[%c0_3, %c0_4] : memref<8x128xf32, #tpu.memory_space<vmem>>, vector<8x3xf32>
    tpu.vector_store %arg9[%c0_3, %c0_4], %2 {strides = array<i32>} : memref<8x128xf32, #tpu.memory_space<vmem>>, vector<8x3xf32>,
    %c0_5 = arith.constant 0 : index
    %c0_6 = arith.constant 0 : index
    %4 = vector.load %arg9[%c0_5, %c0_6] : memref<8x128xf32, #tpu.memory_space<vmem>>, vector<8x128xf32>
    %c0_7 = arith.constant 0 : index
    %c0_8 = arith.constant 0 : index
    %5 = vector.load %arg2[%c0_7, %c0_8] : memref<128x128xf32, #tpu.memory_space<vmem>>, vector<128x128xf32>
    %cst_9 = arith.constant dense<0.000000e+00> : vector<8x128xf32>
    %6 = tpu.matmul %4, %5, %cst_9 {dimension_numbers = #tpu.dot_dimension_numbers<[1], [0], [0], [1], [0, 0, 1, 1], [], []>} : vector<8x128xf32>, vector<128x128xf32>, vector<8x128xf32> -> vector<8x128xf32>
    %c0_10 = arith.constant 0 : index
    %c0_11 = arith.constant 0 : index
    %7 = vector.load %arg3[%c0_10, %c0_11] : memref<1x128xf32, #tpu.memory_space<vmem>>, vector<1x128xf32>
    %8 = vector.broadcast %7 : vector<1x128xf32> to vector<8x128xf32>
    %9 = arith.addf %6, %8 : vector<8x128xf32>
    %cst_12 = arith.constant 0.000000e+00 : f32
    %10 = vector.broadcast %cst_12 : f32 to vector<8x128xf32>
    %11 = arith.maximumf %9, %10 : vector<8x128xf32>
    %c0_13 = arith.constant 0 : index
    %c0_14 = arith.constant 0 : index
    %12 = vector.load %arg4[%c0_13, %c0_14] : memref<128x128xf32, #tpu.memory_space<vmem>>, vector<128x128xf32>
    %cst_15 = arith.constant dense<0.000000e+00> : vector<8x128xf32>
    %13 = tpu.matmul %11, %12, %cst_15 {dimension_numbers = #tpu.dot_dimension_numbers<[1], [0], [0], [1], [0, 0, 1, 1], [], []>} : vector<8x128xf32>, vector<128x128xf32>, vector<8x128xf32> -> vector<8x128xf32>
    %c0_16 = arith.constant 0 : index
    %c0_17 = arith.constant 0 : index
    %14 = vector.load %arg5[%c0_16, %c0_17] : memref<1x128xf32, #tpu.memory_space<vmem>>, vector<1x128xf32>
    %15 = vector.broadcast %14 : vector<1x128xf32> to vector<8x128xf32>
    %16 = arith.addf %13, %15 : vector<8x128xf32>
    %cst_18 = arith.constant 0.000000e+00 : f32
    %17 = vector.broadcast %cst_18 : f32 to vector<8x128xf32>
    %18 = arith.maximumf %16, %17 : vector<8x128xf32>
    %c0_19 = arith.constant 0 : index
    %c0_20 = arith.constant 0 : index
    %19 = vector.load %arg6[%c0_19, %c0_20] : memref<128x128xf32, #tpu.memory_space<vmem>>, vector<128x128xf32>
    %cst_21 = arith.constant dense<0.000000e+00> : vector<8x128xf32>
    %20 = tpu.matmul %18, %19, %cst_21 {dimension_numbers = #tpu.dot_dimension_numbers<[1], [0], [0], [1], [0, 0, 1, 1], [], []>} : vector<8x128xf32>, vector<128x128xf32>, vector<8x128xf32> -> vector<8x128xf32>
    %c0_22 = arith.constant 0 : index
    %c0_23 = arith.constant 0 : index
    %21 = vector.load %arg7[%c0_22, %c0_23] : memref<1x128xf32, #tpu.memory_space<vmem>>, vector<1x128xf32>
    %22 = vector.broadcast %21 : vector<1x128xf32> to vector<8x128xf32>
    %23 = arith.addf %20, %22 : vector<8x128xf32>
    %c0_24 = arith.constant 0 : index
    %c0_25 = arith.constant 0 : index
    %24 = vector.load %arg8[%c0_24, %c0_25] : memref<8x128xf32, #tpu.memory_space<vmem>>, vector<8x128xf32>
    tpu.vector_store %arg8[%c0_24, %c0_25], %23 {strides = array<i32>} : memref<8x128xf32, #tpu.memory_space<vmem>>, vector<8x128xf32>,
    return
  }
  func.func @transform_0(%arg0: i32) -> (i32, i32) {
    %c0_i32 = arith.constant 0 : i32
    %c0_i32_0 = arith.constant 0 : i32
    return %arg0, %c0_i32 : i32, i32
  }
  func.func @transform_1(%arg0: i32) -> (i32, i32) {
    %c0_i32 = arith.constant 0 : i32
    %c0_i32_0 = arith.constant 0 : i32
    %c0_i32_1 = arith.constant 0 : i32
    return %c0_i32, %c0_i32_0 : i32, i32
  }
  func.func @transform_2(%arg0: i32) -> (i32, i32) {
    %c0_i32 = arith.constant 0 : i32
    %c0_i32_0 = arith.constant 0 : i32
    %c0_i32_1 = arith.constant 0 : i32
    return %c0_i32, %c0_i32_0 : i32, i32
  }
  func.func @transform_3(%arg0: i32) -> (i32, i32) {
    %c0_i32 = arith.constant 0 : i32
    %c0_i32_0 = arith.constant 0 : i32
    %c0_i32_1 = arith.constant 0 : i32
    return %c0_i32, %c0_i32_0 : i32, i32
  }
  func.func @transform_4(%arg0: i32) -> (i32, i32) {
    %c0_i32 = arith.constant 0 : i32
    %c0_i32_0 = arith.constant 0 : i32
    %c0_i32_1 = arith.constant 0 : i32
    return %c0_i32, %c0_i32_0 : i32, i32
  }
  func.func @transform_5(%arg0: i32) -> (i32, i32) {
    %c0_i32 = arith.constant 0 : i32
    %c0_i32_0 = arith.constant 0 : i32
    %c0_i32_1 = arith.constant 0 : i32
    return %c0_i32, %c0_i32_0 : i32, i32
  }
  func.func @transform_6(%arg0: i32) -> (i32, i32) {
    %c0_i32 = arith.constant 0 : i32
    %c0_i32_0 = arith.constant 0 : i32
    %c0_i32_1 = arith.constant 0 : i32
    return %c0_i32, %c0_i32_0 : i32, i32
  }
  func.func @transform_7(%arg0: i32) -> (i32, i32) {
    %c0_i32 = arith.constant 0 : i32
    %c0_i32_0 = arith.constant 0 : i32
    return %arg0, %c0_i32 : i32, i32
  }
}

</mosaic_0001>

<bundles_post_ra>
// kernel: iris_forward.1
= control target key start
LH: loop header
LB: loop body
LE: loop exit
PB: predicated region body
PF: predicated region fallthrough
CT: control target
= control target key end

     0   :  { %12 = vsyncpa [#allocation4], 0  ;;  %s815_s0 = inlined_call_operand.vmem [shape: f32[8,3], index: 0, kind: input, shape index: {}]   ;;  %s816_s1 = inlined_call_operand.hbm [shape: f32[128,128], index: 1, kind: input, shape index: {}]   ;;  %s817_s2 = inlined_call_operand.vmem [shape: f32[1,128], index: 2, kind: input, shape index: {}]   ;;  %s818_s3 = inlined_call_operand.hbm [shape: f32[128,128], index: 3, kind: input, shape index: {}]   ;;  %s819_s4 = inlined_call_operand.vmem [shape: f32[1,128], index: 4, kind: input, shape index: {}]   ;;  %s820_s5 = inlined_call_operand.hbm [shape: f32[128,128], index: 5, kind: input, shape index: {}]   ;;  %s821_s6 = inlined_call_operand.vmem [shape: f32[1,128], index: 6, kind: input, shape index: {}]   ;;  %s822_s7 = inlined_call_operand.vmem [shape: f32[8,128], index: 7, kind: output, shape index: {}]  }
   0x1   :  { %13 = vsyncpa [#allocation6], 0  ;;  %s669_s24 = smov [#allocation5]   ;;  %s670_s26 = smov [#allocation3]  }
   0x2   :  { %s35_s25 = sshll.u32 %s669_s24, 4  ;;  %s21_s27 = sshll.u32 %s670_s26, 4  ;;  %s36_s25 = int_to_ptr.vmem [resolvable:$true] %s35_s25  ;;  %s717_s27 = int_to_ptr.vmem [resolvable:$true] %s21_s27 }
   0x3   :  { %s599_s30 = scalar_lea.hbm %s818_s3, 2048 }
   0x4   :  { %p600_p0 = scmp.ne.s32.totalorder %s818_s3, %s599_s30  ;;  %p603_p1 = scmp.lt.u32.totalorder %s599_s30, %s818_s3 }
   0x6   :  { %p605_p2 = pnand %p603_p1, %p600_p0 }
   0x8   :  { %608 = shalt.err (!%p605_p2)
}
   0x9   :  { %s609_s12 = scalar_lea.vmem %s36_s25, 2048  ;;  %p614_p4 = scmp.lt.s32.totalorder %s36_s25, %s36_s25 }
   0xa   :  { %p610_p3 = scmp.ne.s32.totalorder %s36_s25, %s609_s12  ;;  %p615_p5 = scmp.lt.s32.totalorder %s609_s12, %s609_s12 }
   0xc   :  { %p616_p6 = por %p615_p5, %p614_p4 }
   0xe   :  { %p617_p7 = pnand %p616_p6, %p610_p3 }
  0x10   :  { %620 = shalt.err (!%p617_p7)
}
  0x11   :  { %s671_s13 = smov 128   ;;  %s672_s14 = smov 8  }
  0x12   :  { %41 = dma.hbm_to_vmem [thread:$0]  %s818_s3, 2048, %s36_s25, [#allocation6], %s671_s13, %s671_s13, %s672_s14  }
  0x13   :  { %s621_s19 = scalar_lea.hbm %s816_s1, 2048 }
  0x14   :  { %p622_p8 = scmp.ne.s32.totalorder %s816_s1, %s621_s19  ;;  %p625_p9 = scmp.lt.u32.totalorder %s621_s19, %s816_s1 }
  0x16   :  { %p627_p10 = pnand %p625_p9, %p622_p8 }
  0x18   :  { %630 = shalt.err (!%p627_p10)
}
  0x19   :  { %s631_s24 = scalar_lea.vmem %s717_s27, 2048  ;;  %p636_p12 = scmp.lt.s32.totalorder %s717_s27, %s717_s27 }
  0x1a   :  { %p632_p11 = scmp.ne.s32.totalorder %s717_s27, %s631_s24  ;;  %p637_p13 = scmp.lt.s32.totalorder %s631_s24, %s631_s24 }
  0x1c   :  { %p638_p0 = por %p637_p13, %p636_p12 }
  0x1e   :  { %p639_p1 = pnand %p638_p0, %p632_p11 }
  0x20   :  { %642 = shalt.err (!%p639_p1)
}
  0x21   :  { %27 = dma.hbm_to_vmem [thread:$0]  %s816_s1, 2048, %s717_s27, [#allocation4], %s671_s13, %s671_s13, %s672_s14  }
  0x22   :  { %s673_s26 = smov [#allocation7]   ;;  %s643_s8 = scalar_lea.hbm %s820_s5, 2048 }
  0x23   :  { %s49_s28 = sshll.u32 %s673_s26, 4  ;;  %p644_p2 = scmp.ne.s32.totalorder %s820_s5, %s643_s8  ;;  %s50_s28 = int_to_ptr.vmem [resolvable:$true] %s49_s28 }
  0x24   :  { %p647_p3 = scmp.lt.u32.totalorder %s643_s8, %s820_s5 }
  0x26   :  { %p649_p4 = pnand %p647_p3, %p644_p2 }
  0x28   :  { %652 = shalt.err (!%p649_p4)
}
  0x29   :  { %s653_s15 = scalar_lea.vmem %s50_s28, 2048  ;;  %p658_p6 = scmp.lt.s32.totalorder %s50_s28, %s50_s28 }
  0x2a   :  { %p654_p5 = scmp.ne.s32.totalorder %s50_s28, %s653_s15  ;;  %p659_p7 = scmp.lt.s32.totalorder %s653_s15, %s653_s15 }
  0x2c   :  { %p660_p8 = por %p659_p7, %p658_p6 }
  0x2e   :  { %p661_p9 = pnand %p660_p8, %p654_p5 }
  0x30   :  { %664 = shalt.err (!%p661_p9)
}
  0x31   :  { %55 = dma.hbm_to_vmem [thread:$0]  %s820_s5, 2048, %s50_s28, [#allocation6], %s671_s13, %s671_s13, %s672_s14  }
  0x32   :  { %665 = dma.done.wait [#allocation4], 2048  }
  0x33   :  { %666 = vsyncadd [#allocation4], 4294965248 }
  0x34   :  { %667 = dma.done.wait [#allocation6], 4096  }
  0x35   :  { %668 = vsyncadd [#allocation6], 4294963200  ;;  %v674_v0 = vmov 0.0|0.0   ;;  %v675_v1 = vmov 0.0   ;;  %vm676_vm0 = vmmov 0   ;;  %v72_v2 = vld [vmem:[#allocation3] sm:$0xff] }
  0x36   :  { %519 = vmatprep.subr.bf16.mxu0 %v674_v0  ;;  %67 = vst [vmem:[#allocation2] sm:$0xff] %v675_v1  ;;  %446 = vmatprep.mubr.msk.f32.mxu0 %vm676_vm0, %v675_v1  ;;  %v73_v3 = vld [vmem:[#allocation3 + $0x8] sm:$0xff]  ;;  %v74_v4 = vld [vmem:[#allocation3 + $0x10] sm:$0xff]  ;;  %v75_v6 = vld [vmem:[#allocation3 + $0x18] sm:$0xff]  ;;  %vm69_vm1 = vcmask 23552  }
  0x37   :  { %543 = vmatprep.subr.bf16.mxu1 %v674_v0  ;;  %481 = vmatprep.mubr.msk.f32.mxu1 %vm676_vm0, %v675_v1  ;;  %v520_v5 = vpack.c.bf16 %v73_v3, %v72_v2  ;;  %v523_v7 = vpack.c.bf16 %v75_v6, %v74_v4  ;;  %v76_v8 = vld [vmem:[#allocation3 + $0x20] sm:$0xff]  ;;  %v77_v9 = vld [vmem:[#allocation3 + $0x28] sm:$0xff]  ;;  %v68_v10 = vld [vmem:[%s815_s0] sm:$0xff] }
  0x38   :  { %v166_v11 = vld [vmem:[#allocation5] sm:$0xff]  ;;  %70 = vst.msk [vmem:[#allocation2] sm:$0xff] %vm69_vm1, %v68_v10  ;;  %v167_v12 = vld [vmem:[#allocation5 + $0x8] sm:$0xff]  ;;  %v168_v13 = vld [vmem:[#allocation5 + $0x10] sm:$0xff]  ;;  %v526_v15 = vpack.c.bf16 %v77_v9, %v76_v8 }
  0x39   :  { %521 = vmatpush3.bf16.msra.mxu0 %v520_v5  ;;  %v169_v14 = vld [vmem:[#allocation5 + $0x18] sm:$0xff]  ;;  %v544_v16 = vpack.c.bf16 %v167_v12, %v166_v11  ;;  %v78_v17 = vld [vmem:[#allocation3 + $0x30] sm:$0xff]  ;;  %v170_v20 = vld [vmem:[#allocation5 + $0x20] sm:$0xff] }
  0x3a   :  { %522 = vmatprep.subr.bf16.mxu0 %v674_v0  ;;  %v79_v18 = vld [vmem:[#allocation3 + $0x38] sm:$0xff]  ;;  %v547_v19 = vpack.c.bf16 %v169_v14, %v168_v13  ;;  %v171_v21 = vld [vmem:[#allocation5 + $0x28] sm:$0xff]  ;;  %v80_v23 = vld [vmem:[#allocation3 + $0x40] sm:$0xff] }
  0x3b   :  { %545 = vmatpush3.bf16.msra.mxu1 %v544_v16  ;;  %v529_v22 = vpack.c.bf16 %v79_v18, %v78_v17  ;;  %v81_v24 = vld [vmem:[#allocation3 + $0x48] sm:$0xff]  ;;  %v550_v25 = vpack.c.bf16 %v171_v21, %v170_v20  ;;  %v172_v26 = vld [vmem:[#allocation5 + $0x30] sm:$0xff]  ;;  %v173_v27 = vld [vmem:[#allocation5 + $0x38] sm:$0xff] }
  0x3c   :  { %546 = vmatprep.subr.bf16.mxu1 %v674_v0  ;;  %v532_v28 = vpack.c.bf16 %v81_v24, %v80_v23  ;;  %v82_v29 = vld [vmem:[#allocation3 + $0x50] sm:$0xff]  ;;  %v83_v30 = vld [vmem:[#allocation3 + $0x58] sm:$0xff]  ;;  %v553_v31 = vpack.c.bf16 %v173_v27, %v172_v26  ;;  %v174_v32 = vld [vmem:[#allocation5 + $0x40] sm:$0xff] }
  0x3d   :  { %524 = vmatpush3.bf16.msra.mxu0 %v523_v7  ;;  %v175_v33 = vld [vmem:[#allocation5 + $0x48] sm:$0xff]  ;;  %v535_v34 = vpack.c.bf16 %v83_v30, %v82_v29  ;;  %v84_v35 = vld [vmem:[#allocation3 + $0x60] sm:$0xff]  ;;  %v176_v38 = vld [vmem:[#allocation5 + $0x50] sm:$0xff] }
  0x3e   :  { %525 = vmatprep.subr.bf16.mxu0 %v674_v0  ;;  %v85_v36 = vld [vmem:[#allocation3 + $0x68] sm:$0xff]  ;;  %v556_v37 = vpack.c.bf16 %v175_v33, %v174_v32  ;;  %v177_v39 = vld [vmem:[#allocation5 + $0x58] sm:$0xff]  ;;  %v86_v41 = vld [vmem:[#allocation3 + $0x70] sm:$0xff] }
  0x3f   :  { %548 = vmatpush3.bf16.msra.mxu1 %v547_v19  ;;  %v538_v40 = vpack.c.bf16 %v85_v36, %v84_v35  ;;  %v87_v42 = vld [vmem:[#allocation3 + $0x78] sm:$0xff]  ;;  %v559_v43 = vpack.c.bf16 %v177_v39, %v176_v38  ;;  %v178_v44 = vld [vmem:[#allocation5 + $0x60] sm:$0xff]  ;;  %v179_v45 = vld [vmem:[#allocation5 + $0x68] sm:$0xff] }
  0x40   :  { %549 = vmatprep.subr.bf16.mxu1 %v674_v0  ;;  %v541_v46 = vpack.c.bf16 %v87_v42, %v86_v41  ;;  %v562_v47 = vpack.c.bf16 %v179_v45, %v178_v44  ;;  %v71_v48 = vld [vmem:[#allocation2] sm:$0xff]  ;;  %v180_v49 = vld [vmem:[#allocation5 + $0x70] sm:$0xff]  ;;  %v260_v52 = vld [vmem:[#allocation7] sm:$0xff] }
  0x41   :  { %527 = vmatpush3.bf16.msra.mxu0 %v526_v15  ;;  %v181_v50 = vld [vmem:[#allocation5 + $0x78] sm:$0xff]  ;;  %v261_v53 = vld [vmem:[#allocation7 + $0x8] sm:$0xff]  ;;  %v262_v54 = vld [vmem:[#allocation7 + $0x10] sm:$0xff] }
  0x42   :  { %528 = vmatprep.subr.bf16.mxu0 %v674_v0  ;;  %v565_v51 = vpack.c.bf16 %v181_v50, %v180_v49  ;;  %v568_v55 = vpack.c.bf16 %v261_v53, %v260_v52  ;;  %v263_v56 = vld [vmem:[#allocation7 + $0x18] sm:$0xff]  ;;  %v264_v58 = vld [vmem:[#allocation7 + $0x20] sm:$0xff]  ;;  %v265_v59 = vld [vmem:[#allocation7 + $0x28] sm:$0xff] }
  0x43   :  { %551 = vmatpush3.bf16.msra.mxu1 %v550_v25  ;;  %v571_v57 = vpack.c.bf16 %v263_v56, %v262_v54  ;;  %v574_v60 = vpack.c.bf16 %v265_v59, %v264_v58  ;;  %v266_v61 = vld [vmem:[#allocation7 + $0x30] sm:$0xff]  ;;  %v267_v62 = vld [vmem:[#allocation7 + $0x38] sm:$0xff]  ;;  %v269_v2 = vld [vmem:[#allocation7 + $0x48] sm:$0xff] }
  0x44   :  { %552 = vmatprep.subr.bf16.mxu1 %v674_v0  ;;  %v577_v63 = vpack.c.bf16 %v267_v62, %v266_v61  ;;  %v270_v4 = vld [vmem:[#allocation7 + $0x50] sm:$0xff]  ;;  %v271_v5 = vld [vmem:[#allocation7 + $0x58] sm:$0xff]  ;;  %v272_v7 = vld [vmem:[#allocation7 + $0x60] sm:$0xff] }
  0x45   :  { %530 = vmatpush3.bf16.msra.mxu0 %v529_v22  ;;  %v583_v6 = vpack.c.bf16 %v271_v5, %v270_v4  ;;  %v273_v8 = vld [vmem:[#allocation7 + $0x68] sm:$0xff]  ;;  %v360_v10 = vld [vmem:[%s817_s2] ss:$0 sm:$0xff]  ;;  %v274_v15 = vld [vmem:[#allocation7 + $0x70] sm:$0xff] }
  0x46   :  { %531 = vmatprep.subr.bf16.mxu0 %v674_v0  ;;  %v586_v9 = vpack.c.bf16 %v273_v8, %v272_v7  ;;  %v275_v16 = vld [vmem:[#allocation7 + $0x78] sm:$0xff] }
  0x47   :  { %554 = vmatpush3.bf16.msra.mxu1 %v553_v31  ;;  %v589_v17 = vpack.c.bf16 %v275_v16, %v274_v15  ;;  %v361_v18 = vld [vmem:[%s819_s4] ss:$0 sm:$0xff] }
  0x48   :  { %555 = vmatprep.subr.bf16.mxu1 %v674_v0  ;;  %v362_v22 = vld [vmem:[%s821_s6] ss:$0 sm:$0xff] }
  0x49   :  { %533 = vmatpush3.bf16.msra.mxu0 %v532_v28 }
  0x4a   :  { %534 = vmatprep.subr.bf16.mxu0 %v674_v0 }
  0x4b   :  { %557 = vmatpush3.bf16.msra.mxu1 %v556_v37 }
  0x4c   :  { %558 = vmatprep.subr.bf16.mxu1 %v674_v0 }
  0x4d   :  { %536 = vmatpush3.bf16.msra.mxu0 %v535_v34 }
  0x4e   :  { %537 = vmatprep.subr.bf16.mxu0 %v674_v0 }
  0x4f   :  { %560 = vmatpush3.bf16.msra.mxu1 %v559_v43 }
  0x50   :  { %561 = vmatprep.subr.bf16.mxu1 %v674_v0 }
  0x51   :  { %539 = vmatpush3.bf16.msra.mxu0 %v538_v40 }
  0x52   :  { %540 = vmatprep.subr.bf16.mxu0 %v674_v0 }
  0x53   :  { %563 = vmatpush3.bf16.msra.mxu1 %v562_v47 }
  0x54   :  { %564 = vmatprep.subr.bf16.mxu1 %v674_v0 }
  0x55   :  { %542 = vmatpush3.bf16.msra.mxu0 %v541_v46 }
  0x56   :  { %567 = vmatprep.subr.bf16.mxu0 %v674_v0 }
  0x57   :  { %566 = vmatpush3.bf16.msra.mxu1 %v565_v51 }
  0x58   :  { %447 = vmatmul.mubr.f32.vlgmr.msra.gmra.mrb[0].mxu0 %v71_v48 }
  0x59   :  { %516 = vmatprep.mubr.msk.f32.mxu0 %vm676_vm0, %v675_v1  ;;  %569 = vmatpush3.bf16.msra.mxu0 %v568_v55  ;;  %v268_v1 = vld [vmem:[#allocation7 + $0x40] sm:$0xff] }
  0x5a   :  { %570 = vmatprep.subr.bf16.mxu0 %v674_v0  ;;  %v580_v3 = vpack.c.bf16 %v269_v2, %v268_v1 }
  0x5d   :  { %572 = vmatpush3.bf16.msra.mxu0 %v571_v57 }
  0x5e   :  { %573 = vmatprep.subr.bf16.mxu0 %v674_v0 }
  0x61   :  { %575 = vmatpush3.bf16.msra.mxu0 %v574_v60 }
  0x62   :  { %576 = vmatprep.subr.bf16.mxu0 %v674_v0 }
  0x65   :  { %578 = vmatpush3.bf16.msra.mxu0 %v577_v63 }
  0x66   :  { %579 = vmatprep.subr.bf16.mxu0 %v674_v0 }
  0x69   :  { %581 = vmatpush3.bf16.msra.mxu0 %v580_v3 }
  0x6a   :  { %582 = vmatprep.subr.bf16.mxu0 %v674_v0 }
  0x6d   :  { %584 = vmatpush3.bf16.msra.mxu0 %v583_v6 }
  0x6e   :  { %585 = vmatprep.subr.bf16.mxu0 %v674_v0 }
  0x71   :  { %587 = vmatpush3.bf16.msra.mxu0 %v586_v9 }
  0x72   :  { %588 = vmatprep.subr.bf16.mxu0 %v674_v0 }
  0x75   :  { %590 = vmatpush3.bf16.msra.mxu0 %v589_v17 }
 0x12b   :  { %v161_v11 = vpop.f32.mrb[0].mxu0 }
 0x12c   :  { %v162_v12 = vadd.f32 %v360_v10, %v161_v11  ;;  %v448_v13 = vpop.f32.mrb[1].mxu0 }
 0x12e   :  { %v165_v14 = vmax.f32 %v162_v12, 0.0 }
 0x130   :  { %482 = vmatmul.mubr.f32.vlgmr.msra.gmra.mrb[0].mxu1 %v165_v14 }
 0x203   :  { %v255_v19 = vpop.f32.mrb[0].mxu1 }
 0x204   :  { %v256_v20 = vadd.f32 %v361_v18, %v255_v19  ;;  %v483_v0 = vpop.f32.mrb[1].mxu1 }
 0x206   :  { %v259_v21 = vmax.f32 %v256_v20, 0.0 }
 0x208   :  { %517 = vmatmul.mubr.f32.vlgmr.msra.gmra.mrb[2].mxu0 %v259_v21 }
 0x2db   :  { %v349_v23 = vpop.f32.mrb[2].mxu0 }
 0x2dc   :  { %v350_v24 = vadd.f32 %v362_v22, %v349_v23  ;;  %v518_v25 = vpop.f32.mrb[3].mxu0 }
 0x2de   :  { %353 = vst [vmem:[%s822_s7] sm:$0xff] %v350_v24 }
 0x2df   :  { %358 = vsyncpa [#allocation4], 1 }
 0x2e0   :  { %359 = vsyncpa [#allocation6], 1 }

</bundles_post_ra>
